<compile_context>
chip_gen: v7x
topology: tpu7x:2x2x1
jax: 0.10.0
libtpu: 0.0.40
codegen_flags: <defaults>
</compile_context>

<pallas_src>
import jax
import jax.numpy as jnp
import numpy as np
from jax.experimental import pallas as pl
from jax.experimental.pallas import tpu as pltpu


def _round_up(x, m):
    return (x + m - 1) // m * m


def classifier_kernel(x_ref, vq_ref, wq_ref, bq_ref,
                      w1a_ref, w1b_ref, w1c_ref, b1_ref,
                      w2_ref, b2_ref, out_ref):
    # eQ = vecQuestions @ Wq + bq   (bf16 operands, f32 MXU accumulation)
    eq_f32 = jnp.dot(vq_ref[...], wq_ref[...],
                     preferred_element_type=jnp.float32) + bq_ref[...]

    x_bf = x_ref[...]                                   # bf16 (tb, Dc)
    eq_bf = eq_f32.astype(jnp.bfloat16)
    xe_bf = (x_bf.astype(jnp.float32) * eq_f32).astype(jnp.bfloat16)

    # features @ W1 without the concat: split W1 into row blocks, accumulate in f32.
    h = jnp.dot(x_bf,  w1a_ref[...], preferred_element_type=jnp.float32)
    h += jnp.dot(eq_bf, w1b_ref[...], preferred_element_type=jnp.float32)
    h += jnp.dot(xe_bf, w1c_ref[...], preferred_element_type=jnp.float32)
    h += b1_ref[...]

    # ELU(alpha=1): clamp the exp argument so the discarded branch never hits inf.
    h = jnp.where(h > 0, h, jnp.exp(jnp.minimum(h, 0.0)) - 1.0)

    # logits = h @ W2 + b2
    logits = jnp.dot(h.astype(jnp.bfloat16), w2_ref[...],
                     preferred_element_type=jnp.float32) + b2_ref[...]
    out_ref[...] = logits.astype(out_ref.dtype)


def classifier_forward(x_att, vec_questions, params, *, tb=256):
    """x_att: (B, d_ctx), vec_questions: (B, d_model) -> logits (B, num_choices)."""
    wq, bq, w1, b1, w2, b2 = params        # weights stored as (in, out), biases (1, out)
    B, d_ctx = x_att.shape
    Bq, d_model = vec_questions.shape
    in_dim, classifier_dim = w1.shape
    _, num_choices = w2.shape
    assert in_dim == 3 * d_ctx and Bq == B

    # Lane-dense padded sizes (multiples of 128) and batch tile selection.
    Dm = _round_up(d_model, 128)
    Dc = _round_up(d_ctx, 128)
    H = _round_up(classifier_dim, 128)
    Nc = _round_up(num_choices, 128)
    tb = min(tb, _round_up(B, 8))          # don't over-tile tiny batches
    Bp = _round_up(B, tb)                  # ragged batches handled by zero-padding

    f32, bf16 = jnp.float32, jnp.bfloat16

    def pad2(a, rows, cols, dtype):
        a = a.astype(dtype)
        return jnp.pad(a, ((0, rows - a.shape[0]), (0, cols - a.shape[1])))

    x_p = pad2(x_att, Bp, Dc, bf16)
    vq_p = pad2(vec_questions, Bp, Dm, bf16)
    wq_p = pad2(wq, Dm, Dc, bf16)
    bq_p = pad2(bq, 1, Dc, f32)
    w1a = pad2(w1[0 * d_ctx:1 * d_ctx], Dc, H, bf16)
    w1b = pad2(w1[1 * d_ctx:2 * d_ctx], Dc, H, bf16)
    w1c = pad2(w1[2 * d_ctx:3 * d_ctx], Dc, H, bf16)
    b1_p = pad2(b1, 1, H, f32)
    w2_p = pad2(w2, H, Nc, bf16)
    b2_p = pad2(b2, 1, Nc, f32)

    grid = (Bp // tb,)
    matmul_elems = Dm * Dc + 3 * Dc * H + H * Nc
    cost = pl.CostEstimate(
        flops=2 * Bp * matmul_elems,
        transcendentals=Bp * H,
        bytes_accessed=(2 * Bp * (Dc + Dm)          # bf16 activations in
                        + 2 * matmul_elems          # bf16 weights
                        + 4 * (Dc + H + Nc)         # f32 biases
                        + 4 * Bp * Nc),             # f32 logits out
    )

    out_p = pl.pallas_call(
        classifier_kernel,
        out_shape=jax.ShapeDtypeStruct((Bp, Nc), jnp.float32),
        grid_spec=pltpu.PrefetchScalarGridSpec(
            num_scalar_prefetch=0,
            grid=grid,
            in_specs=[
                pl.BlockSpec((tb, Dc), lambda i: (i, 0)),   # x_att
                pl.BlockSpec((tb, Dm), lambda i: (i, 0)),   # vecQuestions
                pl.BlockSpec((Dm, Dc), lambda i: (0, 0)),   # Wq
                pl.BlockSpec((1, Dc), lambda i: (0, 0)),    # bq
                pl.BlockSpec((Dc, H), lambda i: (0, 0)),    # W1 rows for x_att
                pl.BlockSpec((Dc, H), lambda i: (0, 0)),    # W1 rows for eQ
                pl.BlockSpec((Dc, H), lambda i: (0, 0)),    # W1 rows for x_att*eQ
                pl.BlockSpec((1, H), lambda i: (0, 0)),     # b1
                pl.BlockSpec((H, Nc), lambda i: (0, 0)),    # W2
                pl.BlockSpec((1, Nc), lambda i: (0, 0)),    # b2
            ],
            out_specs=pl.BlockSpec((tb, Nc), lambda i: (i, 0)),
        ),
        compiler_params=pltpu.CompilerParams(
            dimension_semantics=("parallel",)),             # batch axis -> megacore
        cost_estimate=cost,
    )(x_p, vq_p, wq_p, bq_p, w1a, w1b, w1c, b1_p, w2_p, b2_p)

    return out_p[:B, :num_choices]


def init_params(key, d_model, d_ctx, classifier_dim, num_choices):
    """Deterministic init mirroring the custom `Linear` fan-avg uniform init."""
    def linear_init(k, in_f, out_f):
        bound = np.sqrt(3.0 / ((in_f + out_f) / 2.0))
        # stored as (in, out) == PyTorch weight (out, in) transposed
        w = jax.random.uniform(k, (in_f, out_f), jnp.float32, -bound, bound)
        b = jnp.zeros((1, out_f), jnp.float32)
        return w, b

    k0, k1, k2 = jax.random.split(key, 3)
    wq, bq = linear_init(k0, d_model, d_ctx)
    w1, b1 = linear_init(k1, 3 * d_ctx, classifier_dim)
    w2, b2 = linear_init(k2, classifier_dim, num_choices)
    return (wq, bq, w1, b1, w2, b2)


def classifier_ref(x_att, vq, params):
    """Pure-JAX reference mirroring the kernel's bf16-operand / f32-accumulate math."""
    wq, bq, w1, b1, w2, b2 = params
    bf, f32 = jnp.bfloat16, jnp.float32
    d_ctx = x_att.shape[1]

    eq = jnp.dot(vq.astype(bf), wq.astype(bf), preferred_element_type=f32) + bq
    x = x_att.astype(bf).astype(f32)
    xe = x * eq

    h = (jnp.dot(x.astype(bf), w1[:d_ctx].astype(bf), preferred_element_type=f32)
         + jnp.dot(eq.astype(bf), w1[d_ctx:2 * d_ctx].astype(bf),
                   preferred_element_type=f32)
         + jnp.dot(xe.astype(bf), w1[2 * d_ctx:].astype(bf),
                   preferred_element_type=f32)
         + b1)
    h = jnp.where(h > 0, h, jnp.exp(jnp.minimum(h, 0.0)) - 1.0)
    return jnp.dot(h.astype(bf), w2.astype(bf), preferred_element_type=f32) + b2


if __name__ == "__main__":
    # Small shapes consistent with the module's forward.
    B, d_model, d_ctx = 8, 32, 32
    classifier_dim, num_choices = 64, 16

    key = jax.random.PRNGKey(0)
    k_x, k_q, k_p = jax.random.split(key, 3)
    x_att = jax.random.normal(k_x, (B, d_ctx), jnp.float32)
    vec_questions = jax.random.normal(k_q, (B, d_model), jnp.float32)
    params = init_params(k_p, d_model, d_ctx, classifier_dim, num_choices)

    logits = classifier_forward(x_att, vec_questions, params)
    logits = jax.block_until_ready(logits)

    ref = classifier_ref(x_att, vec_questions, params)
    np.testing.assert_allclose(np.asarray(logits), np.asarray(ref),
                               rtol=1e-2, atol=1e-2)
    print("KERNEL_OK")
</pallas_src>

<mosaic_0001>
module attributes {stable_mosaic.version = 11 : i64} {
  func.func @classifier_kernel(%arg0: i32, %arg1: memref<8x128xbf16, #tpu.memory_space<vmem>>, %arg2: memref<8x128xbf16, #tpu.memory_space<vmem>>, %arg3: memref<128x128xbf16, #tpu.memory_space<vmem>>, %arg4: memref<1x128xf32, #tpu.memory_space<vmem>>, %arg5: memref<128x128xbf16, #tpu.memory_space<vmem>>, %arg6: memref<128x128xbf16, #tpu.memory_space<vmem>>, %arg7: memref<128x128xbf16, #tpu.memory_space<vmem>>, %arg8: memref<1x128xf32, #tpu.memory_space<vmem>>, %arg9: memref<128x128xbf16, #tpu.memory_space<vmem>>, %arg10: memref<1x128xf32, #tpu.memory_space<vmem>>, %arg11: memref<8x128xf32, #tpu.memory_space<vmem>>) attributes {dimension_semantics = [#tpu.dimension_semantics<parallel>], iteration_bounds = array<i64: 1>, scalar_prefetch = 0 : i64, scratch_operands = 0 : i64, tpu.core_type = #tpu.core_type<tc>, window_params = [{transform_indices = @transform_0, window_bounds = array<i64: 8, 128>}, {transform_indices = @transform_1, window_bounds = array<i64: 8, 128>}, {pipeline_mode = #tpu.pipeline_mode<synchronous>, transform_indices = @transform_2, window_bounds = array<i64: 128, 128>}, {pipeline_mode = #tpu.pipeline_mode<synchronous>, transform_indices = @transform_3, window_bounds = array<i64: 1, 128>}, {pipeline_mode = #tpu.pipeline_mode<synchronous>, transform_indices = @transform_4, window_bounds = array<i64: 128, 128>}, {pipeline_mode = #tpu.pipeline_mode<synchronous>, transform_indices = @transform_5, window_bounds = array<i64: 128, 128>}, {pipeline_mode = #tpu.pipeline_mode<synchronous>, transform_indices = @transform_6, window_bounds = array<i64: 128, 128>}, {pipeline_mode = #tpu.pipeline_mode<synchronous>, transform_indices = @transform_7, window_bounds = array<i64: 1, 128>}, {pipeline_mode = #tpu.pipeline_mode<synchronous>, transform_indices = @transform_8, window_bounds = array<i64: 128, 128>}, {pipeline_mode = #tpu.pipeline_mode<synchronous>, transform_indices = @transform_9, window_bounds = array<i64: 1, 128>}, {transform_indices = @transform_10, window_bounds = array<i64: 8, 128>}]} {
    %c0 = arith.constant 0 : index
    %c0_0 = arith.constant 0 : index
    %0 = vector.load %arg2[%c0, %c0_0] : memref<8x128xbf16, #tpu.memory_space<vmem>>, vector<8x128xbf16>
    %c0_1 = arith.constant 0 : index
    %c0_2 = arith.constant 0 : index
    %1 = vector.load %arg3[%c0_1, %c0_2] : memref<128x128xbf16, #tpu.memory_space<vmem>>, vector<128x128xbf16>
    %cst = arith.constant dense<0.000000e+00> : vector<8x128xf32>
    %2 = tpu.matmul %0, %1, %cst {dimension_numbers = #tpu.dot_dimension_numbers<[1], [0], [0], [1], [0, 0, 1, 1], [], []>} : vector<8x128xbf16>, vector<128x128xbf16>, vector<8x128xf32> -> vector<8x128xf32>
    %c0_3 = arith.constant 0 : index
    %c0_4 = arith.constant 0 : index
    %3 = vector.load %arg4[%c0_3, %c0_4] : memref<1x128xf32, #tpu.memory_space<vmem>>, vector<1x128xf32>
    %4 = vector.broadcast %3 : vector<1x128xf32> to vector<8x128xf32>
    %5 = arith.addf %2, %4 : vector<8x128xf32>
    %c0_5 = arith.constant 0 : index
    %c0_6 = arith.constant 0 : index
    %6 = vector.load %arg1[%c0_5, %c0_6] : memref<8x128xbf16, #tpu.memory_space<vmem>>, vector<8x128xbf16>
    %7 = arith.truncf %5 : vector<8x128xf32> to vector<8x128xbf16>
    %8 = arith.extf %6 : vector<8x128xbf16> to vector<8x128xf32>
    %9 = arith.mulf %8, %5 : vector<8x128xf32>
    %10 = arith.truncf %9 : vector<8x128xf32> to vector<8x128xbf16>
    %c0_7 = arith.constant 0 : index
    %c0_8 = arith.constant 0 : index
    %11 = vector.load %arg5[%c0_7, %c0_8] : memref<128x128xbf16, #tpu.memory_space<vmem>>, vector<128x128xbf16>
    %cst_9 = arith.constant dense<0.000000e+00> : vector<8x128xf32>
    %12 = tpu.matmul %6, %11, %cst_9 {dimension_numbers = #tpu.dot_dimension_numbers<[1], [0], [0], [1], [0, 0, 1, 1], [], []>} : vector<8x128xbf16>, vector<128x128xbf16>, vector<8x128xf32> -> vector<8x128xf32>
    %c0_10 = arith.constant 0 : index
    %c0_11 = arith.constant 0 : index
    %13 = vector.load %arg6[%c0_10, %c0_11] : memref<128x128xbf16, #tpu.memory_space<vmem>>, vector<128x128xbf16>
    %cst_12 = arith.constant dense<0.000000e+00> : vector<8x128xf32>
    %14 = tpu.matmul %7, %13, %cst_12 {dimension_numbers = #tpu.dot_dimension_numbers<[1], [0], [0], [1], [0, 0, 1, 1], [], []>} : vector<8x128xbf16>, vector<128x128xbf16>, vector<8x128xf32> -> vector<8x128xf32>
    %15 = arith.addf %12, %14 : vector<8x128xf32>
    %c0_13 = arith.constant 0 : index
    %c0_14 = arith.constant 0 : index
    %16 = vector.load %arg7[%c0_13, %c0_14] : memref<128x128xbf16, #tpu.memory_space<vmem>>, vector<128x128xbf16>
    %cst_15 = arith.constant dense<0.000000e+00> : vector<8x128xf32>
    %17 = tpu.matmul %10, %16, %cst_15 {dimension_numbers = #tpu.dot_dimension_numbers<[1], [0], [0], [1], [0, 0, 1, 1], [], []>} : vector<8x128xbf16>, vector<128x128xbf16>, vector<8x128xf32> -> vector<8x128xf32>
    %18 = arith.addf %15, %17 : vector<8x128xf32>
    %c0_16 = arith.constant 0 : index
    %c0_17 = arith.constant 0 : index
    %19 = vector.load %arg8[%c0_16, %c0_17] : memref<1x128xf32, #tpu.memory_space<vmem>>, vector<1x128xf32>
    %20 = vector.broadcast %19 : vector<1x128xf32> to vector<8x128xf32>
    %21 = arith.addf %18, %20 : vector<8x128xf32>
    %cst_18 = arith.constant 0.000000e+00 : f32
    %22 = vector.broadcast %cst_18 : f32 to vector<8x128xf32>
    %23 = arith.cmpf ogt, %21, %22 : vector<8x128xf32>
    %cst_19 = arith.constant 0.000000e+00 : f32
    %24 = vector.broadcast %cst_19 : f32 to vector<8x128xf32>
    %25 = arith.minimumf %21, %24 : vector<8x128xf32>
    %26 = math.exp %25 : vector<8x128xf32>
    %cst_20 = arith.constant 1.000000e+00 : f32
    %27 = vector.broadcast %cst_20 : f32 to vector<8x128xf32>
    %28 = arith.subf %26, %27 : vector<8x128xf32>
    %29 = arith.select %23, %21, %28 : vector<8x128xi1>, vector<8x128xf32>
    %30 = arith.truncf %29 : vector<8x128xf32> to vector<8x128xbf16>
    %c0_21 = arith.constant 0 : index
    %c0_22 = arith.constant 0 : index
    %31 = vector.load %arg9[%c0_21, %c0_22] : memref<128x128xbf16, #tpu.memory_space<vmem>>, vector<128x128xbf16>
    %cst_23 = arith.constant dense<0.000000e+00> : vector<8x128xf32>
    %32 = tpu.matmul %30, %31, %cst_23 {dimension_numbers = #tpu.dot_dimension_numbers<[1], [0], [0], [1], [0, 0, 1, 1], [], []>} : vector<8x128xbf16>, vector<128x128xbf16>, vector<8x128xf32> -> vector<8x128xf32>
    %c0_24 = arith.constant 0 : index
    %c0_25 = arith.constant 0 : index
    %33 = vector.load %arg10[%c0_24, %c0_25] : memref<1x128xf32, #tpu.memory_space<vmem>>, vector<1x128xf32>
    %34 = vector.broadcast %33 : vector<1x128xf32> to vector<8x128xf32>
    %35 = arith.addf %32, %34 : vector<8x128xf32>
    %c0_26 = arith.constant 0 : index
    %c0_27 = arith.constant 0 : index
    %36 = vector.load %arg11[%c0_26, %c0_27] : memref<8x128xf32, #tpu.memory_space<vmem>>, vector<8x128xf32>
    tpu.vector_store %arg11[%c0_26, %c0_27], %35 {strides = array<i32>} : memref<8x128xf32, #tpu.memory_space<vmem>>, vector<8x128xf32>,
    return
  }
  func.func @transform_0(%arg0: i32) -> (i32, i32) {
    %c0_i32 = arith.constant 0 : i32
    %c0_i32_0 = arith.constant 0 : i32
    return %arg0, %c0_i32 : i32, i32
  }
  func.func @transform_1(%arg0: i32) -> (i32, i32) {
    %c0_i32 = arith.constant 0 : i32
    %c0_i32_0 = arith.constant 0 : i32
    return %arg0, %c0_i32 : i32, i32
  }
  func.func @transform_2(%arg0: i32) -> (i32, i32) {
    %c0_i32 = arith.constant 0 : i32
    %c0_i32_0 = arith.constant 0 : i32
    %c0_i32_1 = arith.constant 0 : i32
    return %c0_i32, %c0_i32_0 : i32, i32
  }
  func.func @transform_3(%arg0: i32) -> (i32, i32) {
    %c0_i32 = arith.constant 0 : i32
    %c0_i32_0 = arith.constant 0 : i32
    %c0_i32_1 = arith.constant 0 : i32
    return %c0_i32, %c0_i32_0 : i32, i32
  }
  func.func @transform_4(%arg0: i32) -> (i32, i32) {
    %c0_i32 = arith.constant 0 : i32
    %c0_i32_0 = arith.constant 0 : i32
    %c0_i32_1 = arith.constant 0 : i32
    return %c0_i32, %c0_i32_0 : i32, i32
  }
  func.func @transform_5(%arg0: i32) -> (i32, i32) {
    %c0_i32 = arith.constant 0 : i32
    %c0_i32_0 = arith.constant 0 : i32
    %c0_i32_1 = arith.constant 0 : i32
    return %c0_i32, %c0_i32_0 : i32, i32
  }
  func.func @transform_6(%arg0: i32) -> (i32, i32) {
    %c0_i32 = arith.constant 0 : i32
    %c0_i32_0 = arith.constant 0 : i32
    %c0_i32_1 = arith.constant 0 : i32
    return %c0_i32, %c0_i32_0 : i32, i32
  }
  func.func @transform_7(%arg0: i32) -> (i32, i32) {
    %c0_i32 = arith.constant 0 : i32
    %c0_i32_0 = arith.constant 0 : i32
    %c0_i32_1 = arith.constant 0 : i32
    return %c0_i32, %c0_i32_0 : i32, i32
  }
  func.func @transform_8(%arg0: i32) -> (i32, i32) {
    %c0_i32 = arith.constant 0 : i32
    %c0_i32_0 = arith.constant 0 : i32
    %c0_i32_1 = arith.constant 0 : i32
    return %c0_i32, %c0_i32_0 : i32, i32
  }
  func.func @transform_9(%arg0: i32) -> (i32, i32) {
    %c0_i32 = arith.constant 0 : i32
    %c0_i32_0 = arith.constant 0 : i32
    %c0_i32_1 = arith.constant 0 : i32
    return %c0_i32, %c0_i32_0 : i32, i32
  }
  func.func @transform_10(%arg0: i32) -> (i32, i32) {
    %c0_i32 = arith.constant 0 : i32
    %c0_i32_0 = arith.constant 0 : i32
    return %arg0, %c0_i32 : i32, i32
  }
}

</mosaic_0001>

<bundles_post_ra>
// kernel: tpu_custom_call.1
= control target key start
LH: loop header
LB: loop body
LE: loop exit
PB: predicated region body
PF: predicated region fallthrough
CT: control target
= control target key end

     0   :  { %15 = vsyncpa [#allocation3], 0  ;;  %s1369_s0 = inlined_call_operand.hbm [shape: bf16[8,128], index: 0, kind: input, shape index: {}]   ;;  %s1370_s1 = inlined_call_operand.hbm [shape: bf16[8,128], index: 1, kind: input, shape index: {}]   ;;  %s1371_s2 = inlined_call_operand.hbm [shape: bf16[128,128], index: 2, kind: input, shape index: {}]   ;;  %s1372_s3 = inlined_call_operand.vmem [shape: f32[1,128], index: 3, kind: input, shape index: {}]   ;;  %s1373_s4 = inlined_call_operand.hbm [shape: bf16[128,128], index: 4, kind: input, shape index: {}]   ;;  %s1374_s5 = inlined_call_operand.hbm [shape: bf16[128,128], index: 5, kind: input, shape index: {}]   ;;  %s1375_s6 = inlined_call_operand.hbm [shape: bf16[128,128], index: 6, kind: input, shape index: {}]   ;;  %s1376_s7 = inlined_call_operand.vmem [shape: f32[1,128], index: 7, kind: input, shape index: {}]   ;;  %s1377_s8 = inlined_call_operand.hbm [shape: bf16[128,128], index: 8, kind: input, shape index: {}]   ;;  %s1378_s9 = inlined_call_operand.vmem [shape: f32[1,128], index: 9, kind: input, shape index: {}]   ;;  %s1379_s10 = inlined_call_operand.hbm [shape: f32[8,128], index: 10, kind: output, shape index: {}]  }
   0x1   :  { %16 = vsyncpa [#allocation6], 0 }
   0x2   :  { %17 = vsyncpa [#allocation9], 0 }
   0x3   :  { %18 = vsyncpa [#allocation12], 0 }
   0x4   :  { %19 = vsyncpa [#allocation4], 0  ;;  %s1132_s13 = smov [#allocation5]   ;;  %s946_s17 = scalar_lea.hbm %s1370_s1, 64 }
   0x5   :  { %s36_s14 = sshll.u32 %s1132_s13, 4  ;;  %p947_p0 = scmp.ne.s32.totalorder %s1370_s1, %s946_s17  ;;  %s37_s14 = int_to_ptr.vmem [resolvable:$true] %s36_s14 }
   0x6   :  { %p950_p1 = scmp.lt.u32.totalorder %s946_s17, %s1370_s1 }
   0x8   :  { %p952_p2 = pnand %p950_p1, %p947_p0 }
   0xa   :  { %955 = shalt.err (!%p952_p2)
}
   0xb   :  { %s956_s22 = scalar_lea.vmem %s37_s14, 64  ;;  %p961_p4 = scmp.lt.s32.totalorder %s37_s14, %s37_s14 }
   0xc   :  { %p957_p3 = scmp.ne.s32.totalorder %s37_s14, %s956_s22  ;;  %p962_p5 = scmp.lt.s32.totalorder %s956_s22, %s956_s22 }
   0xe   :  { %p963_p6 = por %p962_p5, %p961_p4 }
  0x10   :  { %p964_p7 = pnand %p963_p6, %p957_p3 }
  0x12   :  { %967 = shalt.err (!%p964_p7)
}
  0x13   :  { %39 = dma.hbm_to_vmem [thread:$0]  %s1370_s1, 64, %s37_s14, [#allocation6]  }
  0x14   :  { %s1133_s25 = smov [#allocation8]   ;;  %s1134_s27 = smov [#allocation11]  }
  0x15   :  { %s59_s26 = sshll.u32 %s1133_s25, 4  ;;  %s83_s28 = sshll.u32 %s1134_s27, 4  ;;  %s60_s26 = int_to_ptr.vmem [resolvable:$true] %s59_s26  ;;  %s84_s28 = int_to_ptr.vmem [resolvable:$true] %s83_s28 }
  0x16   :  { %s968_s11 = scalar_lea.hbm %s1373_s4, 1024 }
  0x17   :  { %p969_p8 = scmp.ne.s32.totalorder %s1373_s4, %s968_s11  ;;  %p972_p9 = scmp.lt.u32.totalorder %s968_s11, %s1373_s4 }
  0x19   :  { %p974_p10 = pnand %p972_p9, %p969_p8 }
  0x1b   :  { %977 = shalt.err (!%p974_p10)
}
  0x1c   :  { %s978_s1 = scalar_lea.vmem %s60_s26, 1024  ;;  %p983_p12 = scmp.lt.s32.totalorder %s60_s26, %s60_s26 }
  0x1d   :  { %p979_p11 = scmp.ne.s32.totalorder %s60_s26, %s978_s1  ;;  %p984_p13 = scmp.lt.s32.totalorder %s978_s1, %s978_s1 }
  0x1f   :  { %p985_p0 = por %p984_p13, %p983_p12 }
  0x21   :  { %p986_p1 = pnand %p985_p0, %p979_p11 }
  0x23   :  { %989 = shalt.err (!%p986_p1)
}
  0x24   :  { %s1135_s14 = smov 64   ;;  %s1136_s17 = smov 4  }
  0x25   :  { %65 = dma.hbm_to_vmem [thread:$0]  %s1373_s4, 1024, %s60_s26, [#allocation9], %s1135_s14, %s1135_s14, %s1136_s17  }
  0x26   :  { %s990_s22 = scalar_lea.hbm %s1375_s6, 1024 }
  0x27   :  { %p991_p2 = scmp.ne.s32.totalorder %s1375_s6, %s990_s22  ;;  %p994_p3 = scmp.lt.u32.totalorder %s990_s22, %s1375_s6 }
  0x29   :  { %p996_p4 = pnand %p994_p3, %p991_p2 }
  0x2b   :  { %999 = shalt.err (!%p996_p4)
}
  0x2c   :  { %s1000_s29 = scalar_lea.vmem %s84_s28, 1024  ;;  %p1005_p6 = scmp.lt.s32.totalorder %s84_s28, %s84_s28 }
  0x2d   :  { %p1001_p5 = scmp.ne.s32.totalorder %s84_s28, %s1000_s29  ;;  %p1006_p7 = scmp.lt.s32.totalorder %s1000_s29, %s1000_s29 }
  0x2f   :  { %p1007_p8 = por %p1006_p7, %p1005_p6 }
  0x31   :  { %p1008_p9 = pnand %p1007_p8, %p1001_p5 }
  0x33   :  { %1011 = shalt.err (!%p1008_p9)
}
  0x34   :  { %89 = dma.hbm_to_vmem [thread:$0]  %s1375_s6, 1024, %s84_s28, [#allocation12], %s1135_s14, %s1135_s14, %s1136_s17  }
  0x35   :  { %s1137_s30 = smov [#allocation2]   ;;  %s1138_s12 = smov [#allocation7]  }
  0x36   :  { %s26_s11 = sshll.u32 %s1137_s30, 4  ;;  %s45_s13 = sshll.u32 %s1138_s12, 4  ;;  %s27_s11 = int_to_ptr.vmem [resolvable:$true] %s26_s11  ;;  %s46_s13 = int_to_ptr.vmem [resolvable:$true] %s45_s13 }
  0x37   :  { %s1012_s1 = scalar_lea.hbm %s1369_s0, 64 }
  0x38   :  { %p1013_p10 = scmp.ne.s32.totalorder %s1369_s0, %s1012_s1  ;;  %p1016_p11 = scmp.lt.u32.totalorder %s1012_s1, %s1369_s0 }
  0x3a   :  { %p1018_p12 = pnand %p1016_p11, %p1013_p10 }
  0x3c   :  { %1021 = shalt.err (!%p1018_p12)
}
  0x3d   :  { %s1022_s6 = scalar_lea.vmem %s27_s11, 64  ;;  %p1027_p0 = scmp.lt.s32.totalorder %s27_s11, %s27_s11 }
  0x3e   :  { %p1023_p13 = scmp.ne.s32.totalorder %s27_s11, %s1022_s6  ;;  %p1028_p1 = scmp.lt.s32.totalorder %s1022_s6, %s1022_s6 }
  0x40   :  { %p1029_p2 = por %p1028_p1, %p1027_p0 }
  0x42   :  { %p1030_p3 = pnand %p1029_p2, %p1023_p13 }
  0x44   :  { %1033 = shalt.err (!%p1030_p3)
}
  0x45   :  { %29 = dma.hbm_to_vmem [thread:$0]  %s1369_s0, 64, %s27_s11, [#allocation3]  }
  0x46   :  { %s1034_s25 = scalar_lea.hbm %s1371_s2, 1024 }
  0x47   :  { %p1035_p4 = scmp.ne.s32.totalorder %s1371_s2, %s1034_s25  ;;  %p1038_p5 = scmp.lt.u32.totalorder %s1034_s25, %s1371_s2 }
  0x49   :  { %p1040_p6 = pnand %p1038_p5, %p1035_p4 }
  0x4b   :  { %1043 = shalt.err (!%p1040_p6)
}
  0x4c   :  { %s1044_s30 = scalar_lea.vmem %s46_s13, 1024  ;;  %p1049_p8 = scmp.lt.s32.totalorder %s46_s13, %s46_s13 }
  0x4d   :  { %p1045_p7 = scmp.ne.s32.totalorder %s46_s13, %s1044_s30  ;;  %p1050_p9 = scmp.lt.s32.totalorder %s1044_s30, %s1044_s30 }
  0x4f   :  { %p1051_p10 = por %p1050_p9, %p1049_p8 }
  0x51   :  { %p1052_p11 = pnand %p1051_p10, %p1045_p7 }
  0x53   :  { %1055 = shalt.err (!%p1052_p11)
}
  0x54   :  { %51 = dma.hbm_to_vmem [thread:$0]  %s1371_s2, 1024, %s46_s13, [#allocation6], %s1135_s14, %s1135_s14, %s1136_s17  }
  0x55   :  { %s1139_s12 = smov [#allocation10]   ;;  %s1140_s16 = smov [#allocation13]  }
  0x56   :  { %s71_s15 = sshll.u32 %s1139_s12, 4  ;;  %s97_s1 = sshll.u32 %s1140_s16, 4  ;;  %s72_s15 = int_to_ptr.vmem [resolvable:$true] %s71_s15  ;;  %s98_s1 = int_to_ptr.vmem [resolvable:$true] %s97_s1 }
  0x57   :  { %s1056_s20 = scalar_lea.hbm %s1374_s5, 1024 }
  0x58   :  { %p1057_p12 = scmp.ne.s32.totalorder %s1374_s5, %s1056_s20  ;;  %p1060_p13 = scmp.lt.u32.totalorder %s1056_s20, %s1374_s5 }
  0x5a   :  { %p1062_p0 = pnand %p1060_p13, %p1057_p12 }
  0x5c   :  { %1065 = shalt.err (!%p1062_p0)
}
  0x5d   :  { %s1066_s2 = scalar_lea.vmem %s72_s15, 1024  ;;  %p1071_p2 = scmp.lt.s32.totalorder %s72_s15, %s72_s15 }
  0x5e   :  { %p1067_p1 = scmp.ne.s32.totalorder %s72_s15, %s1066_s2  ;;  %p1072_p3 = scmp.lt.s32.totalorder %s1066_s2, %s1066_s2 }
  0x60   :  { %p1073_p4 = por %p1072_p3, %p1071_p2 }
  0x62   :  { %p1074_p5 = pnand %p1073_p4, %p1067_p1 }
  0x64   :  { %1077 = shalt.err (!%p1074_p5)
}
  0x65   :  { %77 = dma.hbm_to_vmem [thread:$0]  %s1374_s5, 1024, %s72_s15, [#allocation9], %s1135_s14, %s1135_s14, %s1136_s17  }
  0x66   :  { %s1078_s27 = scalar_lea.hbm %s1377_s8, 1024 }
  0x67   :  { %p1079_p6 = scmp.ne.s32.totalorder %s1377_s8, %s1078_s27  ;;  %p1082_p7 = scmp.lt.u32.totalorder %s1078_s27, %s1377_s8 }
  0x69   :  { %p1084_p8 = pnand %p1082_p7, %p1079_p6 }
  0x6b   :  { %1087 = shalt.err (!%p1084_p8)
}
  0x6c   :  { %s1088_s0 = scalar_lea.vmem %s98_s1, 1024  ;;  %p1093_p10 = scmp.lt.s32.totalorder %s98_s1, %s98_s1 }
  0x6d   :  { %p1089_p9 = scmp.ne.s32.totalorder %s98_s1, %s1088_s0  ;;  %p1094_p11 = scmp.lt.s32.totalorder %s1088_s0, %s1088_s0 }
  0x6f   :  { %p1095_p12 = por %p1094_p11, %p1093_p10 }
  0x71   :  { %p1096_p13 = pnand %p1095_p12, %p1089_p9 }
  0x73   :  { %1099 = shalt.err (!%p1096_p13)
}
  0x74   :  { %103 = dma.hbm_to_vmem [thread:$0]  %s1377_s8, 1024, %s98_s1, [#allocation12], %s1135_s14, %s1135_s14, %s1136_s17  }
  0x75   :  { %1122 = dma.done.wait [#allocation3], 64  }
  0x76   :  { %1123 = vsyncadd [#allocation3], 4294967232 }
  0x77   :  { %1124 = dma.done.wait [#allocation6], 1088  }
  0x78   :  { %1125 = vsyncadd [#allocation6], 4294966208 }
  0x79   :  { %1126 = dma.done.wait [#allocation9], 2048  }
  0x7a   :  { %1127 = vsyncadd [#allocation9], 4294965248 }
  0x7b   :  { %1128 = dma.done.wait [#allocation12], 2048  }
  0x7c   :  { %1129 = vsyncadd [#allocation12], 4294965248  ;;  %v1141_v0 = vmov 0.0   ;;  %vm1142_vm0 = vmmov 0   ;;  %v904_v1 = vld [vmem:[#allocation7] sm:$0xff]   ;;  %v905_v2 = vld [vmem:[#allocation7 + $0x8] sm:$0xff]  }
  0x7d   :  { %792 = vmatprep.subr.bf16.mxu0 %v1141_v0  ;;  %808 = vmatprep.mubr.msk.bf16.mxu0 %vm1142_vm0, %v1141_v0  ;;  %v906_v3 = vld [vmem:[#allocation7 + $0x10] sm:$0xff]   ;;  %v912_v4 = vld [vmem:[#allocation10] sm:$0xff]   ;;  %v907_v5 = vld [vmem:[#allocation7 + $0x18] sm:$0xff]   ;;  %s1143_s16 = smov [#allocation14]  }
  0x7e   :  { %812 = vmatprep.subr.bf16.mxu1 %v1141_v0  ;;  %828 = vmatprep.mubr.msk.bf16.mxu1 %vm1142_vm0, %v1141_v0  ;;  %v914_v6 = vld [vmem:[#allocation10 + $0x8] sm:$0xff]   ;;  %v908_v7 = vld [vmem:[#allocation7 + $0x20] sm:$0xff]   ;;  %v916_v8 = vld [vmem:[#allocation10 + $0x10] sm:$0xff]  }
  0x7f   :  { %793 = vmatpush3.bf16.msra.mxu0 %v904_v1  ;;  %813 = vmatpush3.bf16.msra.mxu1 %v912_v4  ;;  %v909_v9 = vld [vmem:[#allocation7 + $0x28] sm:$0xff]   ;;  %v918_v10 = vld [vmem:[#allocation10 + $0x18] sm:$0xff]   ;;  %v910_v11 = vld [vmem:[#allocation7 + $0x30] sm:$0xff]  }
  0x80   :  { %794 = vmatprep.subr.bf16.mxu0 %v1141_v0  ;;  %814 = vmatprep.subr.bf16.mxu1 %v1141_v0  ;;  %v920_v12 = vld [vmem:[#allocation10 + $0x20] sm:$0xff]   ;;  %v911_v13 = vld [vmem:[#allocation7 + $0x38] sm:$0xff]   ;;  %v922_v14 = vld [vmem:[#allocation10 + $0x28] sm:$0xff]  }
  0x81   :  { %v128_v15 = vld [vmem:[#allocation5] sm:$0xf]  ;;  %v913_v16 = vld [vmem:[#allocation8] sm:$0xff]   ;;  %v924_v17 = vld [vmem:[#allocation10 + $0x30] sm:$0xff]  }
  0x82   :  { %v915_v18 = vld [vmem:[#allocation8 + $0x8] sm:$0xff]   ;;  %v917_v19 = vld [vmem:[#allocation8 + $0x10] sm:$0xff]   ;;  %v919_v20 = vld [vmem:[#allocation8 + $0x18] sm:$0xff]  }
  0x83   :  { %795 = vmatpush3.bf16.msra.mxu0 %v905_v2  ;;  %815 = vmatpush3.bf16.msra.mxu1 %v914_v6  ;;  %v921_v21 = vld [vmem:[#allocation8 + $0x20] sm:$0xff]   ;;  %v923_v22 = vld [vmem:[#allocation8 + $0x28] sm:$0xff]   ;;  %v925_v23 = vld [vmem:[#allocation8 + $0x30] sm:$0xff]  }
  0x84   :  { %796 = vmatprep.subr.bf16.mxu0 %v1141_v0  ;;  %816 = vmatprep.subr.bf16.mxu1 %v1141_v0  ;;  %v926_v24 = vld [vmem:[#allocation10 + $0x38] sm:$0xff]   ;;  %v928_v33 = vld [vmem:[#allocation11] sm:$0xff]   ;;  %v929_v37 = vld [vmem:[#allocation11 + $0x8] sm:$0xff]  }
  0x85   :  { %v927_v25 = vld [vmem:[#allocation8 + $0x38] sm:$0xff]   ;;  %v930_v38 = vld [vmem:[#allocation11 + $0x10] sm:$0xff]   ;;  %v932_v40 = vld [vmem:[#allocation11 + $0x20] sm:$0xff]  }
  0x86   :  { %v240_v26 = vld [vmem:[#allocation2] sm:$0xf]  ;;  %v933_v41 = vld [vmem:[#allocation11 + $0x28] sm:$0xff]   ;;  %v934_v42 = vld [vmem:[#allocation11 + $0x30] sm:$0xff]  }
  0x87   :  { %797 = vmatpush3.bf16.msra.mxu0 %v906_v3  ;;  %817 = vmatpush3.bf16.msra.mxu1 %v916_v8  ;;  %v703_v27 = vld [vmem:[%s1372_s3] ss:$0 sm:$0xff]  ;;  %v242_v28 = vunpack.c.l.bf16 %v240_v26  ;;  %v936_v48 = vld [vmem:[#allocation13] sm:$0xff]   ;;  %v937_v50 = vld [vmem:[#allocation13 + $0x8] sm:$0xff]  }
  0x88   :  { %798 = vmatprep.subr.bf16.mxu0 %v1141_v0  ;;  %818 = vmatprep.subr.bf16.mxu1 %v1141_v0  ;;  %v931_v39 = vld [vmem:[#allocation11 + $0x18] sm:$0xff]   ;;  %v938_v51 = vld [vmem:[#allocation13 + $0x10] sm:$0xff]   ;;  %v940_v53 = vld [vmem:[#allocation13 + $0x20] sm:$0xff]  }
  0x89   :  { %v935_v43 = vld [vmem:[#allocation11 + $0x38] sm:$0xff]   ;;  %v941_v54 = vld [vmem:[#allocation13 + $0x28] sm:$0xff]   ;;  %v942_v55 = vld [vmem:[#allocation13 + $0x30] sm:$0xff]  }
  0x8a   :  { %v939_v52 = vld [vmem:[#allocation13 + $0x18] sm:$0xff]  }
  0x8b   :  { %799 = vmatpush3.bf16.msra.mxu0 %v907_v5  ;;  %819 = vmatpush3.bf16.msra.mxu1 %v918_v10  ;;  %v943_v56 = vld [vmem:[#allocation13 + $0x38] sm:$0xff]  }
  0x8c   :  { %800 = vmatprep.subr.bf16.mxu0 %v1141_v0  ;;  %820 = vmatprep.subr.bf16.mxu1 %v1141_v0  ;;  %v736_v63 = vld [vmem:[%s1376_s7] ss:$0 sm:$0xff]  ;;  %s691_s7 = sshll.u32 %s1143_s16, 4  ;;  %s692_s7 = int_to_ptr.vmem [resolvable:$true] %s691_s7 }
  0x8d   :  { %s1100_s1 = scalar_lea.vmem %s692_s7, 128  ;;  %p1105_p1 = scmp.lt.s32.totalorder %s692_s7, %s692_s7 }
  0x8e   :  { %p1101_p0 = scmp.ne.s32.totalorder %s692_s7, %s1100_s1  ;;  %p1106_p2 = scmp.lt.s32.totalorder %s1100_s1, %s1100_s1 }
  0x8f   :  { %801 = vmatpush3.bf16.msra.mxu0 %v908_v7  ;;  %821 = vmatpush3.bf16.msra.mxu1 %v920_v12 }
  0x90   :  { %802 = vmatprep.subr.bf16.mxu0 %v1141_v0  ;;  %822 = vmatprep.subr.bf16.mxu1 %v1141_v0  ;;  %p1107_p3 = por %p1106_p2, %p1105_p1 }
  0x92   :  { %p1108_p4 = pnand %p1107_p3, %p1101_p0 }
  0x93   :  { %803 = vmatpush3.bf16.msra.mxu0 %v909_v9  ;;  %823 = vmatpush3.bf16.msra.mxu1 %v922_v14 }
  0x94   :  { %804 = vmatprep.subr.bf16.mxu0 %v1141_v0  ;;  %824 = vmatprep.subr.bf16.mxu1 %v1141_v0 }
  0x97   :  { %805 = vmatpush3.bf16.msra.mxu0 %v910_v11  ;;  %825 = vmatpush3.bf16.msra.mxu1 %v924_v17  ;;  %v738_v11 = vld [vmem:[%s1378_s9] ss:$0 sm:$0xff] }
  0x98   :  { %806 = vmatprep.subr.bf16.mxu0 %v1141_v0  ;;  %826 = vmatprep.subr.bf16.mxu1 %v1141_v0 }
  0x9b   :  { %807 = vmatpush3.bf16.msra.mxu0 %v911_v13  ;;  %827 = vmatpush3.bf16.msra.mxu1 %v926_v24 }
  0x9c   :  { %832 = vmatprep.subr.bf16.mxu0 %v1141_v0  ;;  %852 = vmatprep.subr.bf16.mxu1 %v1141_v0 }
  0x9e   :  { %809 = vmatmul.mubr.bf16.vlgmr.msra.gmra.mrb[0].mxu0 %v128_v15 }
  0x9f   :  { %833 = vmatpush3.bf16.msra.mxu0 %v913_v16  ;;  %848 = vmatprep.mubr.msk.bf16.mxu0 %vm1142_vm0, %v1141_v0 }
  0xa0   :  { %834 = vmatprep.subr.bf16.mxu0 %v1141_v0 }
  0xa3   :  { %835 = vmatpush3.bf16.msra.mxu0 %v915_v18 }
  0xa4   :  { %836 = vmatprep.subr.bf16.mxu0 %v1141_v0 }
  0xa7   :  { %837 = vmatpush3.bf16.msra.mxu0 %v917_v19 }
  0xa8   :  { %838 = vmatprep.subr.bf16.mxu0 %v1141_v0 }
  0xab   :  { %839 = vmatpush3.bf16.msra.mxu0 %v919_v20 }
  0xac   :  { %840 = vmatprep.subr.bf16.mxu0 %v1141_v0 }
  0xaf   :  { %841 = vmatpush3.bf16.msra.mxu0 %v921_v21 }
  0xb0   :  { %842 = vmatprep.subr.bf16.mxu0 %v1141_v0 }
  0xb3   :  { %843 = vmatpush3.bf16.msra.mxu0 %v923_v22 }
  0xb4   :  { %844 = vmatprep.subr.bf16.mxu0 %v1141_v0 }
  0xb7   :  { %845 = vmatpush3.bf16.msra.mxu0 %v925_v23 }
  0xb8   :  { %846 = vmatprep.subr.bf16.mxu0 %v1141_v0 }
  0xbb   :  { %847 = vmatpush3.bf16.msra.mxu0 %v927_v25 }
  0xbc   :  { %872 = vmatprep.subr.bf16.mxu0 %v1141_v0 }
  0xbe   :  { %849 = vmatmul.mubr.bf16.vlgmr.msra.gmra.mrb[4].mxu0 %v240_v26 }
  0xbf   :  { %888 = vmatprep.mubr.msk.bf16.mxu0 %vm1142_vm0, %v1141_v0  ;;  %873 = vmatpush3.bf16.msra.mxu0 %v936_v48 }
  0xc0   :  { %874 = vmatprep.subr.bf16.mxu0 %v1141_v0 }
  0xc3   :  { %875 = vmatpush3.bf16.msra.mxu0 %v937_v50 }
  0xc4   :  { %876 = vmatprep.subr.bf16.mxu0 %v1141_v0 }
  0xc7   :  { %877 = vmatpush3.bf16.msra.mxu0 %v938_v51 }
  0xc8   :  { %878 = vmatprep.subr.bf16.mxu0 %v1141_v0 }
  0xcb   :  { %879 = vmatpush3.bf16.msra.mxu0 %v939_v52 }
  0xcc   :  { %880 = vmatprep.subr.bf16.mxu0 %v1141_v0 }
  0xcf   :  { %881 = vmatpush3.bf16.msra.mxu0 %v940_v53 }
  0xd0   :  { %882 = vmatprep.subr.bf16.mxu0 %v1141_v0 }
  0xd3   :  { %883 = vmatpush3.bf16.msra.mxu0 %v941_v54 }
  0xd4   :  { %884 = vmatprep.subr.bf16.mxu0 %v1141_v0 }
  0xd7   :  { %885 = vmatpush3.bf16.msra.mxu0 %v942_v55 }
  0xd8   :  { %886 = vmatprep.subr.bf16.mxu0 %v1141_v0 }
  0xdb   :  { %887 = vmatpush3.bf16.msra.mxu0 %v943_v56 }
 0x171   :  { %v234_v29 = vpop.f32.mrb[0].mxu0 }
 0x172   :  { %v235_v30 = vadd.f32 %v703_v27, %v234_v29  ;;  %v810_v31 = vpop.f32.mrb[1].mxu0 }
 0x173   :  { %v237_v32 = vpop.f32.mrb[2].mxu0 }
 0x174   :  { %v241_v34 = vpack.c.bf16 %v235_v30, %v235_v30  ;;  %v243_v35 = vmul.f32 %v242_v28, %v235_v30  ;;  %v811_v36 = vpop.f32.mrb[3].mxu0 }
 0x176   :  { %829 = vmatmul.mubr.bf16.vlgmr.msra.gmra.mrb[0].mxu1 %v241_v34  ;;  %v244_v44 = vpack.c.bf16 %v243_v35, %v243_v35 }
 0x177   :  { %853 = vmatpush3.bf16.msra.mxu1 %v928_v33  ;;  %868 = vmatprep.mubr.msk.bf16.mxu1 %vm1142_vm0, %v1141_v0 }
 0x178   :  { %854 = vmatprep.subr.bf16.mxu1 %v1141_v0 }
 0x17b   :  { %855 = vmatpush3.bf16.msra.mxu1 %v929_v37 }
 0x17c   :  { %856 = vmatprep.subr.bf16.mxu1 %v1141_v0 }
 0x17f   :  { %857 = vmatpush3.bf16.msra.mxu1 %v930_v38 }
 0x180   :  { %858 = vmatprep.subr.bf16.mxu1 %v1141_v0 }
 0x183   :  { %859 = vmatpush3.bf16.msra.mxu1 %v931_v39 }
 0x184   :  { %860 = vmatprep.subr.bf16.mxu1 %v1141_v0 }
 0x187   :  { %861 = vmatpush3.bf16.msra.mxu1 %v932_v40 }
 0x188   :  { %862 = vmatprep.subr.bf16.mxu1 %v1141_v0 }
 0x18b   :  { %863 = vmatpush3.bf16.msra.mxu1 %v933_v41 }
 0x18c   :  { %864 = vmatprep.subr.bf16.mxu1 %v1141_v0 }
 0x18f   :  { %865 = vmatpush3.bf16.msra.mxu1 %v934_v42 }
 0x190   :  { %866 = vmatprep.subr.bf16.mxu1 %v1141_v0 }
 0x191   :  { %v447_v45 = vpop.f32.mrb[4].mxu0 }
 0x192   :  { %v850_v46 = vpop.f32.mrb[5].mxu0 }
 0x193   :  { %867 = vmatpush3.bf16.msra.mxu1 %v935_v43  ;;  %v450_v47 = vpop.f32.mrb[6].mxu0 }
 0x194   :  { %v851_v49 = vpop.f32.mrb[7].mxu0 }
 0x196   :  { %869 = vmatmul.mubr.bf16.vlgmr.msra.gmra.mrb[4].mxu1 %v244_v44 }
 0x249   :  { %v359_v57 = vpop.f32.mrb[0].mxu1 }
 0x24a   :  { %v448_v58 = vadd.f32 %v447_v45, %v359_v57  ;;  %v830_v59 = vpop.f32.mrb[1].mxu1 }
 0x24b   :  { %v362_v60 = vpop.f32.mrb[2].mxu1 }
 0x24c   :  { %v831_v61 = vpop.f32.mrb[3].mxu1 }
 0x269   :  { %v551_v62 = vpop.f32.mrb[4].mxu1 }
 0x26a   :  { %v557_v1 = vadd.f32 %v551_v62, %v448_v58  ;;  %v870_v2 = vpop.f32.mrb[5].mxu1 }
 0x26b   :  { %v554_v3 = vpop.f32.mrb[6].mxu1 }
 0x26c   :  { %v565_v4 = vadd.f32 %v736_v63, %v557_v1  ;;  %v871_v5 = vpop.f32.mrb[7].mxu1 }
 0x26e   :  { %v567_v6 = vmin.f32 %v565_v4, 0.0  ;;  %vm566_vm1 = vcmp.gt.f32.partialorder %v565_v4, 0.0 }
 0x270   :  { %v568_v7 = vmul.f32 1.442695, %v567_v6 }
 0x272   :  { %944 = vpow2.f32 %v568_v7 }
 0x27c   :  { %v945_v0 = vpop.eup %944 }
 0x27d   :  { %v737_v8 = vadd.f32 -1.0, %v945_v0 }
 0x27f   :  { %v571_v9 = vsel %vm566_vm1, %v565_v4, %v737_v8 }
 0x280   :  { %v572_v10 = vpack.c.bf16 %v571_v9, %v571_v9 }
 0x282   :  { %889 = vmatmul.mubr.bf16.vlgmr.msra.gmra.mrb[8].mxu0 %v572_v10 }
 0x355   :  { %v678_v12 = vpop.f32.mrb[8].mxu0 }
 0x356   :  { %v679_v13 = vadd.f32 %v738_v11, %v678_v12  ;;  %v890_v14 = vpop.f32.mrb[9].mxu0 }
 0x357   :  { %v681_v15 = vpop.f32.mrb[10].mxu0 }
 0x358   :  { %684 = vst [vmem:[#allocation14] sm:$0xff] %v679_v13  ;;  %v891_v16 = vpop.f32.mrb[11].mxu0 }
 0x359   :  { %1111 = shalt.err (!%p1108_p4)
}
 0x35a   :  { %s1112_s9 = scalar_lea.hbm %s1379_s10, 128 }
 0x35b   :  { %p1113_p5 = scmp.ne.s32.totalorder %s1379_s10, %s1112_s9  ;;  %p1116_p6 = scmp.lt.u32.totalorder %s1112_s9, %s1379_s10 }
 0x35d   :  { %p1118_p7 = pnand %p1116_p6, %p1113_p5 }
 0x35f   :  { %1121 = shalt.err (!%p1118_p7)
}
 0x360   :  { %694 = dma.vmem_to_hbm [thread:$0]  %s692_s7, 128, %s1379_s10, [#allocation4]  }
 0x361   :  { %1130 = dma.done.wait [#allocation4], 128  }
 0x362   :  { %1131 = vsyncadd [#allocation4], 4294967168 }
 0x363   :  { %698 = vsyncpa [#allocation3], 1 }
 0x364   :  { %699 = vsyncpa [#allocation6], 1 }
 0x365   :  { %700 = vsyncpa [#allocation9], 1 }
 0x366   :  { %701 = vsyncpa [#allocation12], 1 }
 0x367   :  { %702 = vsyncpa [#allocation4], 1 }

</bundles_post_ra>
